<compile_context>
chip_gen: v6e
topology: v6e:2x2x1
jax: 0.10.0
libtpu: 0.0.40
codegen_flags: <defaults>
</compile_context>

<pallas_src>
import jax
import jax.numpy as jnp
from jax.experimental import pallas as pl
from jax.experimental.pallas import tpu as pltpu

INPUT_SIZE = 4
HIDDEN_SIZE = 8
OUTPUT_SIZE = 3

IN_AUG = INPUT_SIZE + 1      # x gets a ones row (fc1 bias fold)
HIDDEN_AUG = HIDDEN_SIZE + 1  # h gets a ones row (fc2 bias fold)


def mlp_kernel(x_ref, w1_ref, w2_ref, o_ref):
    # x_ref : (IN_AUG, TB)       -- batch on lanes, features on sublanes
    # w1_ref: (HIDDEN_AUG, IN_AUG)  = [[W1 | b1], [0...0 | 1]]
    # w2_ref: (OUT, HIDDEN_AUG)     = [W2 | b2]
    # o_ref : (OUT, TB)
    h = jnp.dot(w1_ref[...], x_ref[...], preferred_element_type=jnp.float32)
    h = jnp.maximum(h, 0.0)  # ReLU; the folded ones row stays 1 (1 > 0)
    out = jnp.dot(w2_ref[...], h, preferred_element_type=jnp.float32)
    o_ref[...] = out.astype(o_ref.dtype)


def _fold_biases(w1, b1, w2, b2):
    """Fold biases into augmented weight matrices (done once, outside the kernel)."""
    dt = w1.dtype
    # W1_aug = [[W1, b1], [0, 1]]  -> (HIDDEN+1, IN+1)
    top = jnp.concatenate([w1, b1[:, None]], axis=1)
    bottom = jnp.concatenate(
        [jnp.zeros((1, w1.shape[1]), dt), jnp.ones((1, 1), dt)], axis=1)
    w1_aug = jnp.concatenate([top, bottom], axis=0)
    # W2_aug = [W2, b2]  -> (OUT, HIDDEN+1)
    w2_aug = jnp.concatenate([w2, b2[:, None]], axis=1)
    return w1_aug, w2_aug


def simple_nn_forward(x, w1, b1, w2, b2, *, batch_tile=128):
    """x: [B, in]; w1: [hidden, in]; b1: [hidden]; w2: [out, hidden]; b2: [out]."""
    B = x.shape[0]
    w1_aug, w2_aug = _fold_biases(w1, b1, w2, b2)
    # Lane-dense presentation: (IN+1, B) with a ones row for the fc1 bias fold.
    x_t = jnp.concatenate([x.T, jnp.ones((1, B), x.dtype)], axis=0)

    cost = pl.CostEstimate(
        flops=2 * B * (IN_AUG * HIDDEN_AUG + HIDDEN_AUG * OUTPUT_SIZE),
        transcendentals=0,
        bytes_accessed=4 * (x_t.size + w1_aug.size + w2_aug.size + B * OUTPUT_SIZE),
    )

    if B <= batch_tile:
        # Tiny batch: grid-less, every operand a full-array VMEM block.
        vmem = pl.BlockSpec(memory_space=pltpu.MemorySpace.VMEM)
        out_t = pl.pallas_call(
            mlp_kernel,
            out_shape=jax.ShapeDtypeStruct((OUTPUT_SIZE, B), x.dtype),
            in_specs=[vmem, vmem, vmem],
            out_specs=vmem,
            cost_estimate=cost,
        )(x_t, w1_aug, w2_aug)
        return out_t.T

    # Scalable path: 1-D grid over lane-dense batch tiles; weights resident.
    B_pad = pl.cdiv(B, batch_tile) * batch_tile
    if B_pad != B:
        x_t = jnp.pad(x_t, ((0, 0), (0, B_pad - B)))
    out_t = pl.pallas_call(
        mlp_kernel,
        out_shape=jax.ShapeDtypeStruct((OUTPUT_SIZE, B_pad), x.dtype),
        grid_spec=pltpu.PrefetchScalarGridSpec(
            num_scalar_prefetch=0,
            grid=(B_pad // batch_tile,),
            in_specs=[
                pl.BlockSpec((IN_AUG, batch_tile), lambda i: (0, i)),
                pl.BlockSpec((HIDDEN_AUG, IN_AUG), lambda i: (0, 0)),      # resident
                pl.BlockSpec((OUTPUT_SIZE, HIDDEN_AUG), lambda i: (0, 0)),  # resident
            ],
            out_specs=pl.BlockSpec((OUTPUT_SIZE, batch_tile), lambda i: (0, i)),
        ),
        compiler_params=pltpu.CompilerParams(dimension_semantics=("parallel",)),
        cost_estimate=cost,
    )(x_t, w1_aug, w2_aug)
    return out_t[:, :B].T


def reference_forward(x, w1, b1, w2, b2):
    h = jnp.maximum(x @ w1.T + b1, 0.0)
    return h @ w2.T + b2


if __name__ == "__main__":
    key = jax.random.PRNGKey(0)
    kx, k1, k2, k3, k4 = jax.random.split(key, 5)

    # Deterministic parameter init mimicking nn.Linear's uniform(-1/sqrt(fan_in), ...)
    bound1 = 1.0 / jnp.sqrt(INPUT_SIZE)
    w1 = jax.random.uniform(k1, (HIDDEN_SIZE, INPUT_SIZE), jnp.float32, -bound1, bound1)
    b1 = jax.random.uniform(k2, (HIDDEN_SIZE,), jnp.float32, -bound1, bound1)
    bound2 = 1.0 / jnp.sqrt(HIDDEN_SIZE)
    w2 = jax.random.uniform(k3, (OUTPUT_SIZE, HIDDEN_SIZE), jnp.float32, -bound2, bound2)
    b2 = jax.random.uniform(k4, (OUTPUT_SIZE,), jnp.float32, -bound2, bound2)

    # Small-batch path (grid-less, full-VMEM).
    batch = 8
    x = jax.random.normal(kx, (batch, INPUT_SIZE), dtype=jnp.float32)
    out = simple_nn_forward(x, w1, b1, w2, b2)
    jax.block_until_ready(out)
    ref = reference_forward(x, w1, b1, w2, b2)
    assert out.shape == (batch, OUTPUT_SIZE)
    assert jnp.allclose(out, ref, atol=1e-5, rtol=1e-5)

    # Large-batch path (1-D batch grid, resident weights, "parallel" semantics).
    batch_big = 256
    x_big = jax.random.normal(kx, (batch_big, INPUT_SIZE), dtype=jnp.float32)
    out_big = simple_nn_forward(x_big, w1, b1, w2, b2)
    jax.block_until_ready(out_big)
    ref_big = reference_forward(x_big, w1, b1, w2, b2)
    assert out_big.shape == (batch_big, OUTPUT_SIZE)
    assert jnp.allclose(out_big, ref_big, atol=1e-5, rtol=1e-5)

    print("KERNEL_OK")
</pallas_src>

<mosaic_0001>
module attributes {stable_mosaic.version = 11 : i64} {
  func.func @mlp_kernel(%arg0: memref<5x8xf32, #tpu.memory_space<vmem>>, %arg1: memref<9x5xf32, #tpu.memory_space<vmem>>, %arg2: memref<3x9xf32, #tpu.memory_space<vmem>>, %arg3: memref<3x8xf32, #tpu.memory_space<vmem>>) attributes {dimension_semantics = [], scalar_prefetch = 0 : i64, scratch_operands = 0 : i64, tpu.core_type = #tpu.core_type<tc>} {
    %c0 = arith.constant 0 : index
    %c0_0 = arith.constant 0 : index
    %0 = vector.load %arg1[%c0, %c0_0] : memref<9x5xf32, #tpu.memory_space<vmem>>, vector<9x5xf32>
    %c0_1 = arith.constant 0 : index
    %c0_2 = arith.constant 0 : index
    %1 = vector.load %arg0[%c0_1, %c0_2] : memref<5x8xf32, #tpu.memory_space<vmem>>, vector<5x8xf32>
    %cst = arith.constant dense<0.000000e+00> : vector<9x8xf32>
    %2 = tpu.matmul %0, %1, %cst {dimension_numbers = #tpu.dot_dimension_numbers<[1], [0], [0], [1], [0, 0, 1, 1], [], []>} : vector<9x5xf32>, vector<5x8xf32>, vector<9x8xf32> -> vector<9x8xf32>
    %cst_3 = arith.constant 0.000000e+00 : f32
    %3 = vector.broadcast %cst_3 : f32 to vector<9x8xf32>
    %4 = arith.maximumf %2, %3 : vector<9x8xf32>
    %c0_4 = arith.constant 0 : index
    %c0_5 = arith.constant 0 : index
    %5 = vector.load %arg2[%c0_4, %c0_5] : memref<3x9xf32, #tpu.memory_space<vmem>>, vector<3x9xf32>
    %cst_6 = arith.constant dense<0.000000e+00> : vector<3x8xf32>
    %6 = tpu.matmul %5, %4, %cst_6 {dimension_numbers = #tpu.dot_dimension_numbers<[1], [0], [0], [1], [0, 0, 1, 1], [], []>} : vector<3x9xf32>, vector<9x8xf32>, vector<3x8xf32> -> vector<3x8xf32>
    %c0_7 = arith.constant 0 : index
    %c0_8 = arith.constant 0 : index
    %7 = vector.load %arg3[%c0_7, %c0_8] : memref<3x8xf32, #tpu.memory_space<vmem>>, vector<3x8xf32>
    tpu.vector_store %arg3[%c0_7, %c0_8], %6 {strides = array<i32>} : memref<3x8xf32, #tpu.memory_space<vmem>>, vector<3x8xf32>,
    return
  }
}

</mosaic_0001>

<bundles_post_ra>
// kernel: tpu_custom_call.1
= control target key start
LH: loop header
LB: loop body
LE: loop exit
PB: predicated region body
PF: predicated region fallthrough
CT: control target
= control target key end

     0   :  { %vm25_vm0 = vcmask 1044480   ;;  %vm18_vm1 = vcmask 39936   ;;  %s287_s0 = inlined_call_operand.vmem [shape: f32[5,8], index: 0, kind: input, shape index: {}]   ;;  %s288_s1 = inlined_call_operand.vmem [shape: f32[9,5], index: 1, kind: input, shape index: {}]   ;;  %s289_s2 = inlined_call_operand.vmem [shape: f32[3,9], index: 2, kind: input, shape index: {}]   ;;  %s290_s3 = inlined_call_operand.hbm [shape: f32[3,8], index: 3, kind: output, shape index: {}]  }
   0x1   :  { %v17_v0 = vld [vmem:[%s287_s0] sm:$0x1f]  ;;  %v16_v2 = vld [vmem:[%s288_s1 + $0x8] sm:$0x1] }
   0x2   :  { %v15_v1 = vld [vmem:[%s288_s1] sm:$0xff]  ;;  %212 = vmatprep.subr.msk.mxu0 %vm25_vm0, %v17_v0 }
   0x3   :  { %214 = vmatprep.mubr.msk.f32.mxu0 %vm18_vm1, %v15_v1 }
   0x4   :  { %8 = vsyncpa [#allocation3], 0  ;;  %213 = vmatpush3.msk.msra.mxu0 %vm25_vm0, %v17_v0  ;;  %v249_v3 = vmov 0.0   ;;  %vm250_vm2 = vmmov 0   ;;  %vm111_vm3 = vcmask 1040384   ;;  %vm107_vm4 = vcmask 72704  }
   0x5   :  { %215 = vmatmul.mubr.msk.f32.vlgmr.msra.gmra.mxu0 %vm18_vm1, %v16_v2  ;;  %217 = vmatprep.subr.mxu1 %v249_v3  ;;  %v106_v8 = vld [vmem:[%s289_s2] sm:$0x7]  ;;  %s251_s1 = smov [#allocation2]   ;;  %vm185_vm5 = vcmask 59392  }
   0x6   :  { %221 = vmatprep.mubr.msk.f32.mxu1 %vm250_vm2, %v249_v3  ;;  %s193_s19 = sshll.u32 %s251_s1, 4  ;;  %s194_s19 = int_to_ptr.vmem [resolvable:$true] %s193_s19 }
   0x7   :  { %s227_s20 = scalar_lea.vmem %s194_s19, 64  ;;  %p232_p1 = scmp.lt.s32.totalorder %s194_s19, %s194_s19 }
   0x8   :  { %p228_p0 = scmp.ne.s32.totalorder %s194_s19, %s227_s20  ;;  %p233_p2 = scmp.lt.s32.totalorder %s227_s20, %s227_s20 }
   0xa   :  { %p234_p3 = por %p233_p2, %p232_p1 }
   0xc   :  { %p235_p4 = pnand %p234_p3, %p228_p0 }
  0xc5   :  { %v216_v4 = vpop.f32.mrf.mxu0 }
  0xc6   :  { %v105_v5 = vmax.f32 %v216_v4, 0.0 }
  0xc7   :  { %v95_v6 = vpop.f32.mrf.mxu0 }
  0xc8   :  { %v104_v7 = vmax.f32 %v95_v6, 0.0  ;;  %218 = vmatpush3.msk.msra.mxu1 %vm111_vm3, %v105_v5 }
  0xc9   :  { %219 = vmatprep.subr.mxu1 %v249_v3 }
  0xca   :  { %220 = vmatpush3.msra.mxu1 %v104_v7 }
  0xcb   :  { %222 = vmatmul.mubr.msk.f32.vlgmr.msra.gmra.mxu1 %vm107_vm4, %v106_v8 }
 0x18b   :  { %v181_v9 = vpop.f32.mrf.mxu1 }
 0x18c   :  { %186 = vst.msk [vmem:[#allocation2] sm:$0x7] %vm185_vm5, %v181_v9 }
 0x18d   :  { %v223_v10 = vpop.f32.mrf.mxu1 }
 0x18e   :  { %238 = shalt.err (!%p235_p4)
}
 0x18f   :  { %196 = dma.vmem_to_hbm [thread:$0]  %s194_s19, 64, %s290_s3, [#allocation3]  }
 0x190   :  { %247 = dma.done.wait [#allocation3], 64  }
 0x191   :  { %248 = vsyncadd [#allocation3], 4294967232 }
 0x192   :  { %200 = vsyncpa [#allocation3], 1 }

</bundles_post_ra>
